<compile_context>
chip_gen: v7x
topology: tpu7x:2x2x1
jax: 0.10.0
libtpu: 0.0.40
codegen_flags: <defaults>
</compile_context>

<pallas_src>
import jax
import jax.numpy as jnp
from jax.experimental import pallas as pl
from jax.experimental.pallas import tpu as pltpu


def _pooler_kernel(x_ref, w_ref, b_ref, o_ref):
    # x_ref: (tm, D) first-token activations (input dtype, straight from HBM)
    # w_ref: (D, D)  bf16 weight, (in, out) layout
    # b_ref: (1, D)  f32 bias
    x = x_ref[...].astype(jnp.bfloat16)                    # VPU cast -> MXU bf16 path
    y = jnp.dot(x, w_ref[...], preferred_element_type=jnp.float32)
    y = y + b_ref[...]                                     # f32 bias add
    o_ref[...] = jnp.tanh(y).astype(o_ref.dtype)           # tanh -> EUP slot


def _round_up(x, m):
    return ((x + m - 1) // m) * m


def _choose_tm(n, block_rows):
    """Row-tile size: single grid step for small (weight-DMA / latency bound)
    batches; >= 2 grid steps for large batches so both v7x TensorCores engage."""
    if n <= 256:
        return n
    return max(8, min(block_rows, _round_up(pl.cdiv(n, 2), 8)))


def _pooler_call(x_in, w, b, *, n, d, tm, out_dtype, single_buffer):
    # Grid-invariant operands need only one VMEM buffer each.
    resident = dict(pipeline_mode=pl.Buffered(1)) if single_buffer else {}
    grid = (pl.cdiv(n, tm),)

    x_bytes = n * d * jnp.dtype(x_in.dtype).itemsize
    o_bytes = n * d * jnp.dtype(out_dtype).itemsize
    w_bytes = d * d * jnp.dtype(w.dtype).itemsize
    b_bytes = d * jnp.dtype(b.dtype).itemsize
    cost = pl.CostEstimate(
        flops=2 * n * d * d,
        transcendentals=n * d,
        bytes_accessed=x_bytes + w_bytes + b_bytes + o_bytes,
    )

    return pl.pallas_call(
        _pooler_kernel,
        out_shape=jax.ShapeDtypeStruct((n, d), out_dtype),
        grid=grid,
        in_specs=[
            # First-token rows: column-block 0 of the (N, L*D) view is exactly
            # token 0 of every sequence -> the DMA never touches tokens 1..L-1.
            pl.BlockSpec((tm, d), lambda i: (i, 0)),
            # Grid-invariant weight / bias stay resident in VMEM.
            pl.BlockSpec((d, d), lambda i: (0, 0), **resident),
            pl.BlockSpec((1, d), lambda i: (0, 0), **resident),
        ],
        out_specs=pl.BlockSpec((tm, d), lambda i: (i, 0)),
        compiler_params=pltpu.CompilerParams(
            dimension_semantics=("parallel",),   # row tiles independent -> megacore
        ),
        cost_estimate=cost,
    )(x_in, w, b)


def bert_pooler(hidden_states, weight, bias, *, block_rows=512):
    """BertPooler forward: tanh(hidden_states[:, 0] @ weight.T + bias).

    hidden_states: (N, L, D)
    weight:        (D, D) PyTorch nn.Linear layout (out_features, in_features)
    bias:          (D,) or (1, D)
    """
    n, l, d = hidden_states.shape
    out_dtype = hidden_states.dtype

    # PyTorch Linear is x @ W^T + b: pre-transpose to (in, out) and cast to
    # bf16 for the MXU. In a real model this is done once at load time.
    w = jnp.asarray(weight).T.astype(jnp.bfloat16)
    b = jnp.asarray(bias).reshape(1, d).astype(jnp.float32)

    if d % 128 == 0 or l == 1:
        # Free contiguous reshape; the BlockSpec DMA slices out token 0 only.
        x_in = hidden_states.reshape(n, l * d)
    else:
        # TODO(synk): lane-ragged hidden size (D % 128 != 0) — fall back to an
        # XLA slice of the first token so the BlockSpec stays legal.
        x_in = hidden_states[:, 0, :]

    tm = _choose_tm(n, block_rows)

    try:
        return _pooler_call(x_in, w, b, n=n, d=d, tm=tm,
                            out_dtype=out_dtype, single_buffer=True)
    except Exception:
        # Fallback for jax builds without BlockSpec(pipeline_mode=...):
        # identical kernel, default double-buffered resident operands.
        return _pooler_call(x_in, w, b, n=n, d=d, tm=tm,
                            out_dtype=out_dtype, single_buffer=False)


def bert_pooler_ref(hidden_states, weight, bias):
    first = hidden_states[:, 0, :]
    return jnp.tanh(first @ jnp.asarray(weight).T + jnp.asarray(bias).reshape(1, -1))


if __name__ == "__main__":
    # Small TPU-friendly shapes: batch fills the 8 sublanes, hidden=128 keeps
    # loads/stores lane-dense.
    N, L, D = 8, 8, 128

    root = jax.random.PRNGKey(0)
    kx, kw, kb = jax.random.split(root, 3)

    hidden_states = jax.random.normal(kx, (N, L, D), jnp.float32)
    weight = 0.02 * jax.random.normal(kw, (D, D), jnp.float32)   # PyTorch (out, in)
    bias = 0.01 * jax.random.normal(kb, (D,), jnp.float32)       # PyTorch (D,)

    out = bert_pooler(hidden_states, weight, bias)
    jax.block_until_ready(out)

    ref = bert_pooler_ref(hidden_states, weight, bias)
    assert out.shape == (N, D) and out.dtype == jnp.float32
    # bf16 MXU operands (f32 accumulate) -> loosen tolerance vs f32 reference.
    assert jnp.allclose(out, ref, atol=2e-2, rtol=2e-2), (
        float(jnp.max(jnp.abs(out - ref)))
    )
    print("KERNEL_OK")
</pallas_src>

<mosaic_0001>
module attributes {stable_mosaic.version = 11 : i64} {
  func.func @_pooler_kernel(%arg0: i32, %arg1: memref<8x128xf32, #tpu.memory_space<vmem>>, %arg2: memref<128x128xbf16, #tpu.memory_space<vmem>>, %arg3: memref<1x128xf32, #tpu.memory_space<vmem>>, %arg4: memref<8x128xf32, #tpu.memory_space<vmem>>) attributes {dimension_semantics = [#tpu.dimension_semantics<parallel>], iteration_bounds = array<i64: 1>, scalar_prefetch = 0 : i64, scratch_operands = 0 : i64, tpu.core_type = #tpu.core_type<tc>, window_params = [{transform_indices = @transform_0, window_bounds = array<i64: 8, 128>}, {pipeline_mode = #tpu.pipeline_mode<synchronous>, transform_indices = @transform_1, window_bounds = array<i64: 128, 128>}, {pipeline_mode = #tpu.pipeline_mode<synchronous>, transform_indices = @transform_2, window_bounds = array<i64: 1, 128>}, {transform_indices = @transform_3, window_bounds = array<i64: 8, 128>}]} {
    %c0 = arith.constant 0 : index
    %c0_0 = arith.constant 0 : index
    %0 = vector.load %arg1[%c0, %c0_0] : memref<8x128xf32, #tpu.memory_space<vmem>>, vector<8x128xf32>
    %1 = arith.truncf %0 : vector<8x128xf32> to vector<8x128xbf16>
    %c0_1 = arith.constant 0 : index
    %c0_2 = arith.constant 0 : index
    %2 = vector.load %arg2[%c0_1, %c0_2] : memref<128x128xbf16, #tpu.memory_space<vmem>>, vector<128x128xbf16>
    %cst = arith.constant dense<0.000000e+00> : vector<8x128xf32>
    %3 = tpu.matmul %1, %2, %cst {dimension_numbers = #tpu.dot_dimension_numbers<[1], [0], [0], [1], [0, 0, 1, 1], [], []>} : vector<8x128xbf16>, vector<128x128xbf16>, vector<8x128xf32> -> vector<8x128xf32>
    %c0_3 = arith.constant 0 : index
    %c0_4 = arith.constant 0 : index
    %4 = vector.load %arg3[%c0_3, %c0_4] : memref<1x128xf32, #tpu.memory_space<vmem>>, vector<1x128xf32>
    %5 = vector.broadcast %4 : vector<1x128xf32> to vector<8x128xf32>
    %6 = arith.addf %3, %5 : vector<8x128xf32>
    %7 = math.tanh %6 : vector<8x128xf32>
    %c0_5 = arith.constant 0 : index
    %c0_6 = arith.constant 0 : index
    %8 = vector.load %arg4[%c0_5, %c0_6] : memref<8x128xf32, #tpu.memory_space<vmem>>, vector<8x128xf32>
    tpu.vector_store %arg4[%c0_5, %c0_6], %7 {strides = array<i32>} : memref<8x128xf32, #tpu.memory_space<vmem>>, vector<8x128xf32>,
    return
  }
  func.func @transform_0(%arg0: i32) -> (i32, i32) {
    %c0_i32 = arith.constant 0 : i32
    %c0_i32_0 = arith.constant 0 : i32
    return %arg0, %c0_i32 : i32, i32
  }
  func.func @transform_1(%arg0: i32) -> (i32, i32) {
    %c0_i32 = arith.constant 0 : i32
    %c0_i32_0 = arith.constant 0 : i32
    %c0_i32_1 = arith.constant 0 : i32
    return %c0_i32, %c0_i32_0 : i32, i32
  }
  func.func @transform_2(%arg0: i32) -> (i32, i32) {
    %c0_i32 = arith.constant 0 : i32
    %c0_i32_0 = arith.constant 0 : i32
    %c0_i32_1 = arith.constant 0 : i32
    return %c0_i32, %c0_i32_0 : i32, i32
  }
  func.func @transform_3(%arg0: i32) -> (i32, i32) {
    %c0_i32 = arith.constant 0 : i32
    %c0_i32_0 = arith.constant 0 : i32
    return %arg0, %c0_i32 : i32, i32
  }
}

module attributes {stable_mosaic.version = 11 : i64} {
  func.func @_pooler_kernel(%arg0: i32, %arg1: memref<8x128xf32, #tpu.memory_space<vmem>>, %arg2: memref<128x128xbf16, #tpu.memory_space<vmem>>, %arg3: memref<1x128xf32, #tpu.memory_space<vmem>>, %arg4: memref<8x128xf32, #tpu.memory_space<vmem>>) attributes {dimension_semantics = [#tpu.dimension_semantics<parallel>], iteration_bounds = array<i64: 1>, scalar_prefetch = 0 : i64, scratch_operands = 0 : i64, tpu.core_type = #tpu.core_type<tc>, window_params = [{transform_indices = @transform_0, window_bounds = array<i64: 8, 128>}, {pipeline_mode = #tpu.pipeline_mode<synchronous>, transform_indices = @transform_1, window_bounds = array<i64: 128, 128>}, {pipeline_mode = #tpu.pipeline_mode<synchronous>, transform_indices = @transform_2, window_bounds = array<i64: 1, 128>}, {transform_indices = @transform_3, window_bounds = array<i64: 8, 128>}]} {
    %c0 = arith.constant 0 : index
    %c0_0 = arith.constant 0 : index
    %0 = vector.load %arg1[%c0, %c0_0] : memref<8x128xf32, #tpu.memory_space<vmem>>, vector<8x128xf32>
    %1 = arith.truncf %0 : vector<8x128xf32> to vector<8x128xbf16>
    %c0_1 = arith.constant 0 : index
    %c0_2 = arith.constant 0 : index
    %2 = vector.load %arg2[%c0_1, %c0_2] : memref<128x128xbf16, #tpu.memory_space<vmem>>, vector<128x128xbf16>
    %cst = arith.constant dense<0.000000e+00> : vector<8x128xf32>
    %3 = tpu.matmul %1, %2, %cst {dimension_numbers = #tpu.dot_dimension_numbers<[1], [0], [0], [1], [0, 0, 1, 1], [], []>} : vector<8x128xbf16>, vector<128x128xbf16>, vector<8x128xf32> -> vector<8x128xf32>
    %c0_3 = arith.constant 0 : index
    %c0_4 = arith.constant 0 : index
    %4 = vector.load %arg3[%c0_3, %c0_4] : memref<1x128xf32, #tpu.memory_space<vmem>>, vector<1x128xf32>
    %5 = vector.broadcast %4 : vector<1x128xf32> to vector<8x128xf32>
    %6 = arith.addf %3, %5 : vector<8x128xf32>
    %7 = math.tanh %6 : vector<8x128xf32>
    %c0_5 = arith.constant 0 : index
    %c0_6 = arith.constant 0 : index
    %8 = vector.load %arg4[%c0_5, %c0_6] : memref<8x128xf32, #tpu.memory_space<vmem>>, vector<8x128xf32>
    tpu.vector_store %arg4[%c0_5, %c0_6], %7 {strides = array<i32>} : memref<8x128xf32, #tpu.memory_space<vmem>>, vector<8x128xf32>,
    return
  }
  func.func @transform_0(%arg0: i32) -> (i32, i32) {
    %c0_i32 = arith.constant 0 : i32
    %c0_i32_0 = arith.constant 0 : i32
    return %arg0, %c0_i32 : i32, i32
  }
  func.func @transform_1(%arg0: i32) -> (i32, i32) {
    %c0_i32 = arith.constant 0 : i32
    %c0_i32_0 = arith.constant 0 : i32
    %c0_i32_1 = arith.constant 0 : i32
    return %c0_i32, %c0_i32_0 : i32, i32
  }
  func.func @transform_2(%arg0: i32) -> (i32, i32) {
    %c0_i32 = arith.constant 0 : i32
    %c0_i32_0 = arith.constant 0 : i32
    %c0_i32_1 = arith.constant 0 : i32
    return %c0_i32, %c0_i32_0 : i32, i32
  }
  func.func @transform_3(%arg0: i32) -> (i32, i32) {
    %c0_i32 = arith.constant 0 : i32
    %c0_i32_0 = arith.constant 0 : i32
    return %arg0, %c0_i32 : i32, i32
  }
}

</mosaic_0001>

<bundles_post_ra>
// kernel: tpu_custom_call.1
= control target key start
LH: loop header
LB: loop body
LE: loop exit
PB: predicated region body
PF: predicated region fallthrough
CT: control target
= control target key end

     0   :  { %8 = vsyncpa [#allocation3], 0  ;;  %s376_s0 = inlined_call_operand.hbm [shape: f32[8,1024], index: 0, kind: input, shape index: {}]   ;;  %s377_s1 = inlined_call_operand.hbm [shape: bf16[128,128], index: 1, kind: input, shape index: {}]   ;;  %s378_s2 = inlined_call_operand.vmem [shape: f32[1,128], index: 2, kind: input, shape index: {}]   ;;  %s379_s3 = inlined_call_operand.hbm [shape: f32[8,128], index: 3, kind: output, shape index: {}]  }
   0x1   :  { %9 = vsyncpa [#allocation6], 0 }
   0x2   :  { %10 = vsyncpa [#allocation4], 0  ;;  %s300_s12 = smov [#allocation2]   ;;  %s301_s14 = smov [#allocation5]  }
   0x3   :  { %s17_s13 = sshll.u32 %s300_s12, 4  ;;  %s26_s15 = sshll.u32 %s301_s14, 4  ;;  %s18_s13 = int_to_ptr.vmem [resolvable:$true] %s17_s13  ;;  %s327_s15 = int_to_ptr.vmem [resolvable:$true] %s26_s15 }
   0x4   :  { %s228_s18 = scalar_lea.hbm %s376_s0, 128  ;;  %s230_s23 = scalar_lea.hbm %s376_s0, 1024 }
   0x5   :  { %p229_p0 = scmp.ne.s32.totalorder %s376_s0, %s228_s18  ;;  %p231_p1 = scmp.lt.u32.totalorder %s230_s23, %s228_s18 }
   0x6   :  { %p232_p2 = scmp.lt.u32.totalorder %s228_s18, %s376_s0 }
   0x8   :  { %p233_p3 = por %p232_p2, %p231_p1 }
   0xa   :  { %p234_p4 = pnand %p233_p3, %p229_p0 }
   0xc   :  { %237 = shalt.err (!%p234_p4)
}
   0xd   :  { %s238_s26 = scalar_lea.vmem %s18_s13, 128  ;;  %p243_p6 = scmp.lt.s32.totalorder %s18_s13, %s18_s13 }
   0xe   :  { %p239_p5 = scmp.ne.s32.totalorder %s18_s13, %s238_s26  ;;  %p244_p7 = scmp.lt.s32.totalorder %s238_s26, %s238_s26 }
  0x10   :  { %p245_p8 = por %p244_p7, %p243_p6 }
  0x12   :  { %p246_p9 = pnand %p245_p8, %p239_p5 }
  0x14   :  { %249 = shalt.err (!%p246_p9)
}
  0x15   :  { %20 = dma.hbm_to_vmem [thread:$0]  %s376_s0, 128, %s18_s13, [#allocation3]  }
  0x16   :  { %s250_s4 = scalar_lea.hbm %s377_s1, 1024 }
  0x17   :  { %p251_p10 = scmp.ne.s32.totalorder %s377_s1, %s250_s4  ;;  %p254_p11 = scmp.lt.u32.totalorder %s250_s4, %s377_s1 }
  0x19   :  { %p256_p12 = pnand %p254_p11, %p251_p10 }
  0x1b   :  { %259 = shalt.err (!%p256_p12)
}
  0x1c   :  { %s260_s9 = scalar_lea.vmem %s327_s15, 1024  ;;  %p265_p0 = scmp.lt.s32.totalorder %s327_s15, %s327_s15 }
  0x1d   :  { %p261_p13 = scmp.ne.s32.totalorder %s327_s15, %s260_s9  ;;  %p266_p1 = scmp.lt.s32.totalorder %s260_s9, %s260_s9 }
  0x1f   :  { %p267_p2 = por %p266_p1, %p265_p0 }
  0x21   :  { %p268_p3 = pnand %p267_p2, %p261_p13 }
  0x23   :  { %271 = shalt.err (!%p268_p3)
}
  0x24   :  { %s302_s0 = smov 64   ;;  %s303_s10 = smov 4  }
  0x25   :  { %32 = dma.hbm_to_vmem [thread:$0]  %s377_s1, 1024, %s327_s15, [#allocation6], %s302_s0, %s302_s0, %s303_s10  }
  0x26   :  { %294 = dma.done.wait [#allocation3], 128  }
  0x27   :  { %295 = vsyncadd [#allocation3], 4294967168 }
  0x28   :  { %296 = dma.done.wait [#allocation6], 1024  }
  0x29   :  { %297 = vsyncadd [#allocation6], 4294966272  ;;  %v304_v0 = vmov 0.0   ;;  %vm305_vm0 = vmmov 0   ;;  %v218_v1 = vld [vmem:[#allocation5] sm:$0xff]   ;;  %v219_v2 = vld [vmem:[#allocation5 + $0x8] sm:$0xff]  }
  0x2a   :  { %191 = vmatprep.subr.bf16.mxu0 %v304_v0  ;;  %207 = vmatprep.mubr.msk.bf16.mxu0 %vm305_vm0, %v304_v0  ;;  %v220_v3 = vld [vmem:[#allocation5 + $0x10] sm:$0xff]   ;;  %v221_v4 = vld [vmem:[#allocation5 + $0x18] sm:$0xff]   ;;  %v222_v5 = vld [vmem:[#allocation5 + $0x20] sm:$0xff]   ;;  %s306_s14 = smov [#allocation7]  }
  0x2b   :  { %192 = vmatpush3.bf16.msra.mxu0 %v218_v1  ;;  %v223_v6 = vld [vmem:[#allocation5 + $0x28] sm:$0xff]   ;;  %v224_v7 = vld [vmem:[#allocation5 + $0x30] sm:$0xff]   ;;  %v225_v8 = vld [vmem:[#allocation5 + $0x38] sm:$0xff]   ;;  %s163_s15 = sshll.u32 %s306_s14, 4  ;;  %s164_s15 = int_to_ptr.vmem [resolvable:$true] %s163_s15 }
  0x2c   :  { %193 = vmatprep.subr.bf16.mxu0 %v304_v0  ;;  %v42_v9 = vld [vmem:[#allocation2] sm:$0xff]  ;;  %s272_s16 = scalar_lea.vmem %s164_s15, 128  ;;  %p277_p5 = scmp.lt.s32.totalorder %s164_s15, %s164_s15 }
  0x2d   :  { %v43_v10 = vpack.c.bf16 %v42_v9, %v42_v9  ;;  %v173_v11 = vld [vmem:[%s378_s2] ss:$0 sm:$0xff]  ;;  %p273_p4 = scmp.ne.s32.totalorder %s164_s15, %s272_s16  ;;  %p278_p6 = scmp.lt.s32.totalorder %s272_s16, %s272_s16 }
  0x2f   :  { %194 = vmatpush3.bf16.msra.mxu0 %v219_v2  ;;  %p279_p7 = por %p278_p6, %p277_p5 }
  0x30   :  { %195 = vmatprep.subr.bf16.mxu0 %v304_v0 }
  0x31   :  { %p280_p8 = pnand %p279_p7, %p273_p4 }
  0x33   :  { %196 = vmatpush3.bf16.msra.mxu0 %v220_v3 }
  0x34   :  { %197 = vmatprep.subr.bf16.mxu0 %v304_v0 }
  0x37   :  { %198 = vmatpush3.bf16.msra.mxu0 %v221_v4 }
  0x38   :  { %199 = vmatprep.subr.bf16.mxu0 %v304_v0 }
  0x3b   :  { %200 = vmatpush3.bf16.msra.mxu0 %v222_v5 }
  0x3c   :  { %201 = vmatprep.subr.bf16.mxu0 %v304_v0 }
  0x3f   :  { %202 = vmatpush3.bf16.msra.mxu0 %v223_v6 }
  0x40   :  { %203 = vmatprep.subr.bf16.mxu0 %v304_v0 }
  0x43   :  { %204 = vmatpush3.bf16.msra.mxu0 %v224_v7 }
  0x44   :  { %205 = vmatprep.subr.bf16.mxu0 %v304_v0 }
  0x47   :  { %206 = vmatpush3.bf16.msra.mxu0 %v225_v8 }
  0x4a   :  { %208 = vmatmul.mubr.bf16.vlgmr.msra.gmra.mrb[0].mxu0 %v43_v10 }
 0x11d   :  { %v149_v12 = vpop.f32.mrb[0].mxu0 }
 0x11e   :  { %v150_v13 = vadd.f32 %v173_v11, %v149_v12  ;;  %v209_v14 = vpop.f32.mrb[1].mxu0 }
 0x11f   :  { %v152_v15 = vpop.f32.mrb[2].mxu0 }
 0x120   :  { %226 = vtanh.f32 %v150_v13  ;;  %v210_v16 = vpop.f32.mrb[3].mxu0 }
 0x12a   :  { %v227_v17 = vpop.eup %226 }
 0x12b   :  { %156 = vst [vmem:[#allocation7] sm:$0xff] %v227_v17 }
 0x12c   :  { %283 = shalt.err (!%p280_p8)
}
 0x12d   :  { %s284_s18 = scalar_lea.hbm %s379_s3, 128 }
 0x12e   :  { %p285_p9 = scmp.ne.s32.totalorder %s379_s3, %s284_s18  ;;  %p288_p10 = scmp.lt.u32.totalorder %s284_s18, %s379_s3 }
 0x130   :  { %p290_p11 = pnand %p288_p10, %p285_p9 }
 0x132   :  { %293 = shalt.err (!%p290_p11)
}
 0x133   :  { %166 = dma.vmem_to_hbm [thread:$0]  %s164_s15, 128, %s379_s3, [#allocation4]  }
 0x134   :  { %298 = dma.done.wait [#allocation4], 128  }
 0x135   :  { %299 = vsyncadd [#allocation4], 4294967168 }
 0x136   :  { %170 = vsyncpa [#allocation3], 1 }
 0x137   :  { %171 = vsyncpa [#allocation6], 1 }
 0x138   :  { %172 = vsyncpa [#allocation4], 1 }

// kernel: tpu_custom_call.1
= control target key start
LH: loop header
LB: loop body
LE: loop exit
PB: predicated region body
PF: predicated region fallthrough
CT: control target
= control target key end

     0   :  { %8 = vsyncpa [#allocation3], 0  ;;  %s376_s0 = inlined_call_operand.hbm [shape: f32[8,1024], index: 0, kind: input, shape index: {}]   ;;  %s377_s1 = inlined_call_operand.hbm [shape: bf16[128,128], index: 1, kind: input, shape index: {}]   ;;  %s378_s2 = inlined_call_operand.vmem [shape: f32[1,128], index: 2, kind: input, shape index: {}]   ;;  %s379_s3 = inlined_call_operand.hbm [shape: f32[8,128], index: 3, kind: output, shape index: {}]  }
   0x1   :  { %9 = vsyncpa [#allocation6], 0 }
   0x2   :  { %10 = vsyncpa [#allocation4], 0  ;;  %s300_s12 = smov [#allocation2]   ;;  %s301_s14 = smov [#allocation5]  }
   0x3   :  { %s17_s13 = sshll.u32 %s300_s12, 4  ;;  %s26_s15 = sshll.u32 %s301_s14, 4  ;;  %s18_s13 = int_to_ptr.vmem [resolvable:$true] %s17_s13  ;;  %s327_s15 = int_to_ptr.vmem [resolvable:$true] %s26_s15 }
   0x4   :  { %s228_s18 = scalar_lea.hbm %s376_s0, 128  ;;  %s230_s23 = scalar_lea.hbm %s376_s0, 1024 }
   0x5   :  { %p229_p0 = scmp.ne.s32.totalorder %s376_s0, %s228_s18  ;;  %p231_p1 = scmp.lt.u32.totalorder %s230_s23, %s228_s18 }
   0x6   :  { %p232_p2 = scmp.lt.u32.totalorder %s228_s18, %s376_s0 }
   0x8   :  { %p233_p3 = por %p232_p2, %p231_p1 }
   0xa   :  { %p234_p4 = pnand %p233_p3, %p229_p0 }
   0xc   :  { %237 = shalt.err (!%p234_p4)
}
   0xd   :  { %s238_s26 = scalar_lea.vmem %s18_s13, 128  ;;  %p243_p6 = scmp.lt.s32.totalorder %s18_s13, %s18_s13 }
   0xe   :  { %p239_p5 = scmp.ne.s32.totalorder %s18_s13, %s238_s26  ;;  %p244_p7 = scmp.lt.s32.totalorder %s238_s26, %s238_s26 }
  0x10   :  { %p245_p8 = por %p244_p7, %p243_p6 }
  0x12   :  { %p246_p9 = pnand %p245_p8, %p239_p5 }
  0x14   :  { %249 = shalt.err (!%p246_p9)
}
  0x15   :  { %20 = dma.hbm_to_vmem [thread:$0]  %s376_s0, 128, %s18_s13, [#allocation3]  }
  0x16   :  { %s250_s4 = scalar_lea.hbm %s377_s1, 1024 }
  0x17   :  { %p251_p10 = scmp.ne.s32.totalorder %s377_s1, %s250_s4  ;;  %p254_p11 = scmp.lt.u32.totalorder %s250_s4, %s377_s1 }
  0x19   :  { %p256_p12 = pnand %p254_p11, %p251_p10 }
  0x1b   :  { %259 = shalt.err (!%p256_p12)
}
  0x1c   :  { %s260_s9 = scalar_lea.vmem %s327_s15, 1024  ;;  %p265_p0 = scmp.lt.s32.totalorder %s327_s15, %s327_s15 }
  0x1d   :  { %p261_p13 = scmp.ne.s32.totalorder %s327_s15, %s260_s9  ;;  %p266_p1 = scmp.lt.s32.totalorder %s260_s9, %s260_s9 }
  0x1f   :  { %p267_p2 = por %p266_p1, %p265_p0 }
  0x21   :  { %p268_p3 = pnand %p267_p2, %p261_p13 }
  0x23   :  { %271 = shalt.err (!%p268_p3)
}
  0x24   :  { %s302_s0 = smov 64   ;;  %s303_s10 = smov 4  }
  0x25   :  { %32 = dma.hbm_to_vmem [thread:$0]  %s377_s1, 1024, %s327_s15, [#allocation6], %s302_s0, %s302_s0, %s303_s10  }
  0x26   :  { %294 = dma.done.wait [#allocation3], 128  }
  0x27   :  { %295 = vsyncadd [#allocation3], 4294967168 }
  0x28   :  { %296 = dma.done.wait [#allocation6], 1024  }
  0x29   :  { %297 = vsyncadd [#allocation6], 4294966272  ;;  %v304_v0 = vmov 0.0   ;;  %vm305_vm0 = vmmov 0   ;;  %v218_v1 = vld [vmem:[#allocation5] sm:$0xff]   ;;  %v219_v2 = vld [vmem:[#allocation5 + $0x8] sm:$0xff]  }
  0x2a   :  { %191 = vmatprep.subr.bf16.mxu0 %v304_v0  ;;  %207 = vmatprep.mubr.msk.bf16.mxu0 %vm305_vm0, %v304_v0  ;;  %v220_v3 = vld [vmem:[#allocation5 + $0x10] sm:$0xff]   ;;  %v221_v4 = vld [vmem:[#allocation5 + $0x18] sm:$0xff]   ;;  %v222_v5 = vld [vmem:[#allocation5 + $0x20] sm:$0xff]   ;;  %s306_s14 = smov [#allocation7]  }
  0x2b   :  { %192 = vmatpush3.bf16.msra.mxu0 %v218_v1  ;;  %v223_v6 = vld [vmem:[#allocation5 + $0x28] sm:$0xff]   ;;  %v224_v7 = vld [vmem:[#allocation5 + $0x30] sm:$0xff]   ;;  %v225_v8 = vld [vmem:[#allocation5 + $0x38] sm:$0xff]   ;;  %s163_s15 = sshll.u32 %s306_s14, 4  ;;  %s164_s15 = int_to_ptr.vmem [resolvable:$true] %s163_s15 }
  0x2c   :  { %193 = vmatprep.subr.bf16.mxu0 %v304_v0  ;;  %v42_v9 = vld [vmem:[#allocation2] sm:$0xff]  ;;  %s272_s16 = scalar_lea.vmem %s164_s15, 128  ;;  %p277_p5 = scmp.lt.s32.totalorder %s164_s15, %s164_s15 }
  0x2d   :  { %v43_v10 = vpack.c.bf16 %v42_v9, %v42_v9  ;;  %v173_v11 = vld [vmem:[%s378_s2] ss:$0 sm:$0xff]  ;;  %p273_p4 = scmp.ne.s32.totalorder %s164_s15, %s272_s16  ;;  %p278_p6 = scmp.lt.s32.totalorder %s272_s16, %s272_s16 }
  0x2f   :  { %194 = vmatpush3.bf16.msra.mxu0 %v219_v2  ;;  %p279_p7 = por %p278_p6, %p277_p5 }
  0x30   :  { %195 = vmatprep.subr.bf16.mxu0 %v304_v0 }
  0x31   :  { %p280_p8 = pnand %p279_p7, %p273_p4 }
  0x33   :  { %196 = vmatpush3.bf16.msra.mxu0 %v220_v3 }
  0x34   :  { %197 = vmatprep.subr.bf16.mxu0 %v304_v0 }
  0x37   :  { %198 = vmatpush3.bf16.msra.mxu0 %v221_v4 }
  0x38   :  { %199 = vmatprep.subr.bf16.mxu0 %v304_v0 }
  0x3b   :  { %200 = vmatpush3.bf16.msra.mxu0 %v222_v5 }
  0x3c   :  { %201 = vmatprep.subr.bf16.mxu0 %v304_v0 }
  0x3f   :  { %202 = vmatpush3.bf16.msra.mxu0 %v223_v6 }
  0x40   :  { %203 = vmatprep.subr.bf16.mxu0 %v304_v0 }
  0x43   :  { %204 = vmatpush3.bf16.msra.mxu0 %v224_v7 }
  0x44   :  { %205 = vmatprep.subr.bf16.mxu0 %v304_v0 }
  0x47   :  { %206 = vmatpush3.bf16.msra.mxu0 %v225_v8 }
  0x4a   :  { %208 = vmatmul.mubr.bf16.vlgmr.msra.gmra.mrb[0].mxu0 %v43_v10 }
 0x11d   :  { %v149_v12 = vpop.f32.mrb[0].mxu0 }
 0x11e   :  { %v150_v13 = vadd.f32 %v173_v11, %v149_v12  ;;  %v209_v14 = vpop.f32.mrb[1].mxu0 }
 0x11f   :  { %v152_v15 = vpop.f32.mrb[2].mxu0 }
 0x120   :  { %226 = vtanh.f32 %v150_v13  ;;  %v210_v16 = vpop.f32.mrb[3].mxu0 }
 0x12a   :  { %v227_v17 = vpop.eup %226 }
 0x12b   :  { %156 = vst [vmem:[#allocation7] sm:$0xff] %v227_v17 }
 0x12c   :  { %283 = shalt.err (!%p280_p8)
}
 0x12d   :  { %s284_s18 = scalar_lea.hbm %s379_s3, 128 }
 0x12e   :  { %p285_p9 = scmp.ne.s32.totalorder %s379_s3, %s284_s18  ;;  %p288_p10 = scmp.lt.u32.totalorder %s284_s18, %s379_s3 }
 0x130   :  { %p290_p11 = pnand %p288_p10, %p285_p9 }
 0x132   :  { %293 = shalt.err (!%p290_p11)
}
 0x133   :  { %166 = dma.vmem_to_hbm [thread:$0]  %s164_s15, 128, %s379_s3, [#allocation4]  }
 0x134   :  { %298 = dma.done.wait [#allocation4], 128  }
 0x135   :  { %299 = vsyncadd [#allocation4], 4294967168 }
 0x136   :  { %170 = vsyncpa [#allocation3], 1 }
 0x137   :  { %171 = vsyncpa [#allocation6], 1 }
 0x138   :  { %172 = vsyncpa [#allocation4], 1 }

</bundles_post_ra>
